<compile_context>
chip_gen: v7x
topology: tpu7x:2x2x1
jax: 0.10.0
libtpu: 0.0.40
codegen_flags: <defaults>
</compile_context>

<pallas_src>
import jax
import jax.numpy as jnp
from jax.experimental import pallas as pl
from jax.experimental.pallas import tpu as pltpu


# ---------------------------------------------------------------------------
# Budget constants
# ---------------------------------------------------------------------------
# Per-grid-step VMEM footprint budget: 2x double-buffered HBM-dtype input tiles
# plus the in-kernel f32 upcast/loss temporaries.  28 MiB is safe on every
# generation (v5e/v6e: 128 MiB physical; v7x: 64 MiB physical).
_DEFAULT_VMEM_FOOTPRINT = 28 * 1024 * 1024
# Scoped-VMEM limit handed to Mosaic: above the 16/32 MiB scoped defaults so the
# budget above is actually usable, but below v7x's 64 MiB physical VMEM.
_VMEM_LIMIT_BYTES = 48 * 1024 * 1024
# Below this much total input, launch + pipeline fixed cost dominates -> use the
# fused jnp path instead of pallas_call.
_MIN_PALLAS_BYTES = 256 * 1024


def _stable_bce(x, t):
    # PyTorch's numerically stable BCE-with-logits:
    #   loss = max(x, 0) - x * t + log(1 + exp(-|x|))
    return jnp.maximum(x, 0.0) - x * t + jnp.log1p(jnp.exp(-jnp.abs(x)))


# ---------------------------------------------------------------------------
# Kernels
# ---------------------------------------------------------------------------
def _make_row_kernel(has_mask, inv_l, group, width):
    """Single-pass kernel: each block covers the full (possibly packed) row width.

    group == width  -> plain mean over the whole row (standard path).
    group <  width  -> each packed row holds width//group original rows; reduce per
                       group with a constant 0/1 block-diagonal matmul on the MXU.
    """
    rpv = width // group  # original rows per packed row

    def kernel(*refs):
        if has_mask:
            x_ref, t_ref, m_ref, o_ref = refs
        else:
            x_ref, t_ref, o_ref = refs
        x = x_ref[...].astype(jnp.float32)
        t = t_ref[...].astype(jnp.float32)
        loss = _stable_bce(x, t)
        if has_mask:
            loss = loss * m_ref[...].astype(jnp.float32)
        if rpv == 1:
            # Output block is (tb, 1).  Output traffic is <= 1/(2*L) of the input
            # traffic on this path (L >= 128), so the narrow store is noise; keep
            # the simple layout rather than relayouting to a lane-dense row.
            o_ref[...] = jnp.sum(loss, axis=1, keepdims=True) * inv_l
        else:
            # sel[c, r] = 1 iff packed column c belongs to original row r.
            col = jax.lax.broadcasted_iota(jnp.int32, (width, rpv), 0)
            row = jax.lax.broadcasted_iota(jnp.int32, (width, rpv), 1)
            sel = (col // group == row).astype(jnp.float32)
            o_ref[...] = jnp.dot(
                loss, sel,
                preferred_element_type=jnp.float32,
                precision=jax.lax.Precision.HIGHEST,
            ) * inv_l

    return kernel


def _make_ltiled_kernel(has_mask, inv_l, seq_len, tile_l):
    """Two-axis kernel for very long rows: grid=(row blocks, L blocks), f32 accumulator."""
    needs_col_mask = (seq_len % tile_l) != 0

    def kernel(*refs):
        if has_mask:
            x_ref, t_ref, m_ref, o_ref, acc_ref = refs
        else:
            x_ref, t_ref, o_ref, acc_ref = refs
        k = pl.program_id(1)

        @pl.when(k == 0)
        def _init():
            acc_ref[...] = jnp.zeros_like(acc_ref)

        x = x_ref[...].astype(jnp.float32)
        t = t_ref[...].astype(jnp.float32)
        loss = _stable_bce(x, t)
        if has_mask:
            loss = loss * m_ref[...].astype(jnp.float32)
        if needs_col_mask:
            # Padded columns of a ragged last L-block hold unspecified data and
            # WOULD mix into the row sum; zero them before accumulating.
            col = k * tile_l + jax.lax.broadcasted_iota(jnp.int32, loss.shape, 1)
            loss = jnp.where(col < seq_len, loss, 0.0)
        acc_ref[...] += jnp.sum(loss, axis=1, keepdims=True)

        @pl.when(k == pl.num_programs(1) - 1)
        def _finalize():
            o_ref[...] = acc_ref[...] * inv_l

    return kernel


# ---------------------------------------------------------------------------
# Tile selection
# ---------------------------------------------------------------------------
def _row_footprint_bytes(width, in_itemsizes):
    # 2x (double-buffered) HBM-dtype tile per input + ~(n_inputs + 1) f32 rows for
    # the in-kernel upcasts and the pre-reduce loss block.
    return width * (2 * sum(in_itemsizes) + 4 * (len(in_itemsizes) + 1))


def _pick_row_tile(n_rows, width, in_itemsizes, budget_bytes):
    """Largest multiple-of-8 row tile whose pipelined footprint fits the budget."""
    if n_rows <= 8:
        return n_rows
    per_row = max(_row_footprint_bytes(width, in_itemsizes), 1)
    tb = budget_bytes // per_row
    if n_rows >= 16:
        # Guarantee >= 2 grid steps so the "parallel" row axis can shard across
        # v7x's two TensorCores (harmless on single-TC v5e/v6e).
        tb = min(tb, ((n_rows + 1) // 2 + 7) // 8 * 8)
    tb = min(tb, n_rows)
    return max(8, (tb // 8) * 8)


# ---------------------------------------------------------------------------
# Wrapper
# ---------------------------------------------------------------------------
def sigmoid_bce_loss(inputs, target, mask=None, *, block_b=None, block_l=None,
                     vmem_budget_bytes=_DEFAULT_VMEM_FOOTPRINT,
                     min_pallas_bytes=_MIN_PALLAS_BYTES):
    """Pallas equivalent of SigmoidBCELoss.forward.

    inputs/target: (B, L) float32 / bfloat16 (target may also be integer or bool).
    mask: optional (B, L) float / int8 / bool weight.  Returns (B,) float32.

    Matches PyTorch's binary_cross_entropy_with_logits(weight=mask,
    reduction='none').mean(dim=1): the divisor is L, not the mask count.
    """
    B, L = inputs.shape
    assert target.shape == (B, L)
    has_mask = mask is not None
    if target.dtype == jnp.bool_:
        target = target.astype(jnp.int8)
    if has_mask:
        assert mask.shape == (B, L)
        if mask.dtype == jnp.bool_:
            # Narrow int masks stream straight through the kernel; bools are
            # converted up front to keep the Mosaic lowering simple.
            mask = mask.astype(jnp.int8)

    inv_l = 1.0 / float(L)
    operands = (inputs, target, mask) if has_mask else (inputs, target)
    total_in_bytes = sum(int(o.size) * int(o.dtype.itemsize) for o in operands)

    # --- tiny-problem fallback: launch/pipeline fixed cost dwarfs the math ---
    if total_in_bytes < min_pallas_bytes:
        x = inputs.astype(jnp.float32)
        t = target.astype(jnp.float32)
        loss = _stable_bce(x, t)
        if has_mask:
            loss = loss * mask.astype(jnp.float32)
        return jnp.mean(loss, axis=1)

    in_itemsizes = [int(o.dtype.itemsize) for o in operands]
    cost = pl.CostEstimate(
        flops=int(7 * B * L),
        transcendentals=int(2 * B * L),
        bytes_accessed=int(total_in_bytes + B * 4),
    )

    need_l_tiling = block_l is not None or (
        _row_footprint_bytes(L, in_itemsizes) * 8 > vmem_budget_bytes)

    if not need_l_tiling:
        # ----- single-pass row path (optionally lane-packed for small L) -----
        rpv = 1
        if L < 128 and 128 % L == 0 and B % (128 // L) == 0:
            rpv = 128 // L                       # original rows per 128-lane row
        width = rpv * L
        n_rows = B // rpv
        ops = tuple(o.reshape(n_rows, width) for o in operands) if rpv > 1 else operands

        tb = block_b if block_b is not None else _pick_row_tile(
            n_rows, width, in_itemsizes, vmem_budget_bytes)
        tb = max(1, min(tb, n_rows))

        grid = (pl.cdiv(n_rows, tb),)
        in_spec = pl.BlockSpec((tb, width), lambda i: (i, 0))
        out_spec = pl.BlockSpec((tb, rpv), lambda i: (i, 0))
        kernel = _make_row_kernel(has_mask, inv_l, group=L, width=width)

        out = pl.pallas_call(
            kernel,
            out_shape=jax.ShapeDtypeStruct((n_rows, rpv), jnp.float32),
            grid=grid,
            in_specs=[in_spec] * len(ops),
            out_specs=out_spec,
            compiler_params=pltpu.CompilerParams(
                dimension_semantics=("parallel",),
                vmem_limit_bytes=_VMEM_LIMIT_BYTES),
            cost_estimate=cost,
        )(*ops)
        # Rows never mix across blocks and a ragged last row-block only stores
        # in-bounds rows, so n_rows % tb != 0 is safe.
        return out.reshape(B)

    # ----- large-L path: second ("arbitrary") grid axis over L + accumulator -----
    per_elem = 2 * sum(in_itemsizes) + 4 * (len(in_itemsizes) + 1)
    if block_l is not None:
        tl = min(block_l, L)
    else:
        tl = max(128, (vmem_budget_bytes // (8 * per_elem)) // 128 * 128)
        tl = min(tl, L)
    tb = block_b if block_b is not None else _pick_row_tile(
        B, tl, in_itemsizes, vmem_budget_bytes)
    tb = max(1, min(tb, B))

    grid = (pl.cdiv(B, tb), pl.cdiv(L, tl))
    in_spec = pl.BlockSpec((tb, tl), lambda i, k: (i, k))
    out_spec = pl.BlockSpec((tb, 1), lambda i, k: (i, 0))
    kernel = _make_ltiled_kernel(has_mask, inv_l, seq_len=L, tile_l=tl)

    out = pl.pallas_call(
        kernel,
        out_shape=jax.ShapeDtypeStruct((B, 1), jnp.float32),
        grid=grid,
        in_specs=[in_spec] * len(operands),
        out_specs=out_spec,
        scratch_shapes=[pltpu.VMEM((tb, 1), jnp.float32)],
        compiler_params=pltpu.CompilerParams(
            dimension_semantics=("parallel", "arbitrary"),
            vmem_limit_bytes=_VMEM_LIMIT_BYTES),
        cost_estimate=cost,
    )(*operands)
    return out.reshape(B)


# ---------------------------------------------------------------------------
# Reference + tests
# ---------------------------------------------------------------------------
def _ref_loss(x, t, m=None):
    x = x.astype(jnp.float32)
    t = t.astype(jnp.float32)
    loss = _stable_bce(x, t)
    if m is not None:
        loss = loss * m.astype(jnp.float32)
    return jnp.mean(loss, axis=1)


if __name__ == "__main__":
    keys = jax.random.split(jax.random.PRNGKey(0), 12)

    # (1) Module-sized shape (batch=2, labels=8): default dispatch uses the fused
    #     jnp fallback (too small for pallas_call); also force the Pallas path.
    B, L = 2, 8
    x = jax.random.normal(keys[0], (B, L), dtype=jnp.float32)
    t = jax.random.bernoulli(keys[1], 0.5, (B, L)).astype(jnp.float32)
    m = jax.random.bernoulli(keys[2], 0.75, (B, L)).astype(jnp.float32)
    out_small = sigmoid_bce_loss(x, t, m)                          # jnp fallback
    out_small_pl = sigmoid_bce_loss(x, t, m, min_pallas_bytes=0)   # Pallas path
    jax.block_until_ready((out_small, out_small_pl))
    ref_small = _ref_loss(x, t, m)
    assert out_small.shape == (B,)
    assert jnp.allclose(out_small, ref_small, atol=1e-6, rtol=1e-6)
    assert jnp.allclose(out_small_pl, ref_small, atol=1e-5, rtol=1e-5)

    # (2) Lane-packed small-L path (L=8 -> 16 rows per 128-lane vreg), bool mask
    #     (converted to int8 in the wrapper), plus the unmasked variant.
    B, L = 64, 8
    x = jax.random.normal(keys[3], (B, L), dtype=jnp.float32)
    t = jax.random.bernoulli(keys[4], 0.5, (B, L)).astype(jnp.float32)
    m_bool = jax.random.bernoulli(keys[5], 0.75, (B, L))
    out_packed = sigmoid_bce_loss(x, t, m_bool, min_pallas_bytes=0)
    out_packed_nm = sigmoid_bce_loss(x, t, min_pallas_bytes=0)
    jax.block_until_ready((out_packed, out_packed_nm))
    assert out_packed.shape == (B,) and out_packed_nm.shape == (B,)
    assert jnp.allclose(out_packed, _ref_loss(x, t, m_bool), atol=1e-3, rtol=1e-3)
    assert jnp.allclose(out_packed_nm, _ref_loss(x, t), atol=1e-3, rtol=1e-3)

    # (3) Batch-tiled standard path: bf16 inputs + int8 mask (low HBM traffic),
    #     auto-picked tile gives >= 2 grid steps.
    B, L = 64, 256
    x = jax.random.normal(keys[6], (B, L), dtype=jnp.float32).astype(jnp.bfloat16)
    t = jax.random.bernoulli(keys[7], 0.5, (B, L)).astype(jnp.bfloat16)
    m8 = jax.random.bernoulli(keys[8], 0.75, (B, L)).astype(jnp.int8)
    out_bf16 = sigmoid_bce_loss(x, t, m8, min_pallas_bytes=0)
    jax.block_until_ready(out_bf16)
    assert jnp.allclose(out_bf16, _ref_loss(x, t, m8), atol=2e-3, rtol=2e-3)

    # (4) L-tiled accumulator path (forced via block_l); 640 % 256 != 0 also
    #     exercises the padded-column masking of the ragged last L block.
    B, L = 32, 640
    x = jax.random.normal(keys[9], (B, L), dtype=jnp.float32)
    t = jax.random.bernoulli(keys[10], 0.5, (B, L)).astype(jnp.float32)
    m = jax.random.bernoulli(keys[11], 0.75, (B, L)).astype(jnp.float32)
    out_lt = sigmoid_bce_loss(x, t, m, min_pallas_bytes=0, block_b=16, block_l=256)
    jax.block_until_ready(out_lt)
    assert jnp.allclose(out_lt, _ref_loss(x, t, m), atol=1e-5, rtol=1e-5)

    print("KERNEL_OK")
</pallas_src>

<mosaic_0001>
module attributes {stable_mosaic.version = 11 : i64} {
  func.func @kernel(%arg0: i32, %arg1: memref<2x8xf32, #tpu.memory_space<vmem>>, %arg2: memref<2x8xf32, #tpu.memory_space<vmem>>, %arg3: memref<2x8xf32, #tpu.memory_space<vmem>>, %arg4: memref<2x1xf32, #tpu.memory_space<vmem>>) attributes {dimension_semantics = [#tpu.dimension_semantics<parallel>], iteration_bounds = array<i64: 1>, scalar_prefetch = 0 : i64, scratch_operands = 0 : i64, tpu.core_type = #tpu.core_type<tc>, window_params = [{transform_indices = @transform_0, window_bounds = array<i64: 2, 8>}, {transform_indices = @transform_1, window_bounds = array<i64: 2, 8>}, {transform_indices = @transform_2, window_bounds = array<i64: 2, 8>}, {transform_indices = @transform_3, window_bounds = array<i64: 2, 1>}]} {
    %c0 = arith.constant 0 : index
    %c0_0 = arith.constant 0 : index
    %0 = vector.load %arg1[%c0, %c0_0] : memref<2x8xf32, #tpu.memory_space<vmem>>, vector<2x8xf32>
    %c0_1 = arith.constant 0 : index
    %c0_2 = arith.constant 0 : index
    %1 = vector.load %arg2[%c0_1, %c0_2] : memref<2x8xf32, #tpu.memory_space<vmem>>, vector<2x8xf32>
    %cst = arith.constant 0.000000e+00 : f32
    %2 = vector.broadcast %cst : f32 to vector<2x8xf32>
    %3 = arith.maximumf %0, %2 : vector<2x8xf32>
    %4 = arith.mulf %0, %1 : vector<2x8xf32>
    %5 = arith.subf %3, %4 : vector<2x8xf32>
    %6 = math.absf %0 : vector<2x8xf32>
    %cst_3 = arith.constant 0.000000e+00 : f32
    %7 = vector.broadcast %cst_3 : f32 to vector<2x8xf32>
    %8 = arith.subf %7, %6 : vector<2x8xf32>
    %9 = math.exp %8 : vector<2x8xf32>
    %10 = math.log1p %9 : vector<2x8xf32>
    %11 = arith.addf %5, %10 : vector<2x8xf32>
    %c0_4 = arith.constant 0 : index
    %c0_5 = arith.constant 0 : index
    %12 = vector.load %arg3[%c0_4, %c0_5] : memref<2x8xf32, #tpu.memory_space<vmem>>, vector<2x8xf32>
    %13 = arith.mulf %11, %12 : vector<2x8xf32>
    %cst_6 = arith.constant dense<0.000000e+00> : vector<2xf32>
    %14 = vector.multi_reduction <add>, %13, %cst_6 [1] : vector<2x8xf32> to vector<2xf32>
    %15 = vector.shape_cast %14 : vector<2xf32> to vector<2x1xf32>
    %cst_7 = arith.constant 1.250000e-01 : f32
    %16 = vector.broadcast %cst_7 : f32 to vector<2x1xf32>
    %17 = arith.mulf %15, %16 : vector<2x1xf32>
    %c0_8 = arith.constant 0 : index
    %c0_9 = arith.constant 0 : index
    %18 = vector.load %arg4[%c0_8, %c0_9] : memref<2x1xf32, #tpu.memory_space<vmem>>, vector<2x1xf32>
    tpu.vector_store %arg4[%c0_8, %c0_9], %17 {strides = array<i32>} : memref<2x1xf32, #tpu.memory_space<vmem>>, vector<2x1xf32>,
    return
  }
  func.func @transform_0(%arg0: i32) -> (i32, i32) {
    %c0_i32 = arith.constant 0 : i32
    %c0_i32_0 = arith.constant 0 : i32
    return %arg0, %c0_i32 : i32, i32
  }
  func.func @transform_1(%arg0: i32) -> (i32, i32) {
    %c0_i32 = arith.constant 0 : i32
    %c0_i32_0 = arith.constant 0 : i32
    return %arg0, %c0_i32 : i32, i32
  }
  func.func @transform_2(%arg0: i32) -> (i32, i32) {
    %c0_i32 = arith.constant 0 : i32
    %c0_i32_0 = arith.constant 0 : i32
    return %arg0, %c0_i32 : i32, i32
  }
  func.func @transform_3(%arg0: i32) -> (i32, i32) {
    %c0_i32 = arith.constant 0 : i32
    %c0_i32_0 = arith.constant 0 : i32
    return %arg0, %c0_i32 : i32, i32
  }
}

</mosaic_0001>

<bundles_post_ra>
// kernel: tpu_custom_call.1
= control target key start
LH: loop header
LB: loop body
LE: loop exit
PB: predicated region body
PF: predicated region fallthrough
CT: control target
= control target key end

     0   :  { %8 = vsyncpa [#allocation3], 0  ;;  %s88_s12 = smov [#allocation2]   ;;  %s130_s0 = inlined_call_operand.hbm [shape: f32[2,8], index: 0, kind: input, shape index: {}]   ;;  %s131_s1 = inlined_call_operand.vmem [shape: f32[2,8], index: 1, kind: input, shape index: {}]   ;;  %s132_s2 = inlined_call_operand.vmem [shape: f32[2,8], index: 2, kind: input, shape index: {}]   ;;  %s133_s3 = inlined_call_operand.vmem [shape: f32[2,1], index: 3, kind: output, shape index: {}]  }
   0x1   :  { %s15_s13 = sshll.u32 %s88_s12, 4  ;;  %s64_s16 = scalar_lea.hbm %s130_s0, 32  ;;  %s16_s13 = int_to_ptr.vmem [resolvable:$true] %s15_s13 }
   0x2   :  { %p65_p0 = scmp.ne.s32.totalorder %s130_s0, %s64_s16  ;;  %p68_p1 = scmp.lt.u32.totalorder %s64_s16, %s130_s0 }
   0x4   :  { %p70_p2 = pnand %p68_p1, %p65_p0 }
   0x6   :  { %73 = shalt.err (!%p70_p2)
}
   0x7   :  { %s74_s21 = scalar_lea.vmem %s16_s13, 32  ;;  %p79_p4 = scmp.lt.s32.totalorder %s16_s13, %s16_s13 }
   0x8   :  { %p75_p3 = scmp.ne.s32.totalorder %s16_s13, %s74_s21  ;;  %p80_p5 = scmp.lt.s32.totalorder %s74_s21, %s74_s21 }
   0xa   :  { %p81_p6 = por %p80_p5, %p79_p4 }
   0xc   :  { %p82_p7 = pnand %p81_p6, %p75_p3 }
   0xe   :  { %85 = shalt.err (!%p82_p7)
}
   0xf   :  { %18 = dma.hbm_to_vmem [thread:$0]  %s130_s0, 32, %s16_s13, [#allocation3]  }
  0x10   :  { %86 = dma.done.wait [#allocation3], 32  }
  0x11   :  { %87 = vsyncadd [#allocation3], 4294967264  ;;  %v26_v0 = vld [vmem:[#allocation2] sm:$0x3]  ;;  %vm47_vm1 = vcmask 58368   ;;  %vm52_vm2 = vcmask 1024  }
  0x12   :  { %v31_v1 = vand.u32 2147483647, %v26_v0  ;;  %v27_v7 = vld [vmem:[%s131_s1] sm:$0x3]  ;;  %v28_v9 = vmax.f32 %v26_v0, 0.0 }
  0x13   :  { %v29_v10 = vmul.f32 %v27_v7, %v26_v0  ;;  %v45_v17 = vld [vmem:[%s132_s2] sm:$0x3] }
  0x14   :  { %v32_v2 = vsub.f32 0.0, %v31_v1 }
  0x15   :  { %v30_v14 = vsub.f32 %v28_v9, %v29_v10 }
  0x16   :  { %v33_v3 = vmul.f32 1.442695, %v32_v2 }
  0x18   :  { %60 = vpow2.f32 %v33_v3 }
  0x22   :  { %v61_v4 = vpop.eup %60 }
  0x23   :  { %v35_v5 = vadd.f32 1.0, %v61_v4  ;;  %v38_v6 = vmul.f32 -0.5, %v61_v4  ;;  %v41_v11 = vand.u32 2147483647, %v61_v4 }
  0x25   :  { %62 = vlog2.f32 %v35_v5  ;;  %v39_v8 = vadd.f32 1.0, %v38_v6  ;;  %vm42_vm0 = vcmp.lt.f32.partialorder %v41_v11, 0.0004427343 }
  0x27   :  { %v40_v12 = vmul.f32 %v61_v4, %v39_v8 }
  0x2f   :  { %v63_v13 = vpop.eup %62 }
  0x30   :  { %v37_v15 = vmul.f32 0.6931472, %v63_v13 }
  0x32   :  { %v43_v16 = vsel %vm42_vm0, %v40_v12, %v37_v15 }
  0x33   :  { %v44_v18 = vadd.f32 %v43_v16, %v30_v14 }
  0x35   :  { %v46_v19 = vmul.f32 %v45_v17, %v44_v18 }
  0x37   :  { %v48_v20 = vsel %vm47_vm1, %v46_v19, 0.0 }
  0x38   :  { %49 = vadd.xlane.f32.xlu0 %v48_v20 }
  0xc5   :  { %v50_v21 = vpop.xlane.xlu0 %49 }
  0xc6   :  { %v51_v22 = vmul.f32 0.125, %v50_v21 }
  0xc8   :  { %53 = vst.msk [vmem:[%s133_s3] sm:$0x3] %vm52_vm2, %v51_v22 }
  0xc9   :  { %58 = vsyncpa [#allocation3], 1 }

</bundles_post_ra>
